<compile_context>
chip_gen: v7x
topology: tpu7x:2x2x1
jax: 0.10.0
libtpu: 0.0.40
codegen_flags: <defaults>
</compile_context>

<pallas_src>
import jax
import jax.numpy as jnp
from jax.experimental import pallas as pl
from jax.experimental.pallas import tpu as pltpu

_LANE = 128


def _round_up(x, m):
    return (x + m - 1) // m * m


def _choose_hw_tile(hw, batch, max_tile=1024):
    """Largest lane-aligned HW tile <= max_tile, keeping >= 2 grid steps."""
    t = min(max_tile, _round_up(hw, _LANE))
    t = _round_up(t, _LANE)
    # Keep at least 2 grid steps so both v7x TensorCores get work.
    while t > _LANE and batch * pl.cdiv(hw, t) < 2:
        t = _round_up(t // 2, _LANE)
    return t


def _conv1x1_kernel(x_ref, w_ref, b_ref, o_ref):
    # x_ref: (C, thw) f32   w_ref: (C, Np) bf16   b_ref: (1, Np) f32
    # o_ref: (thw, Np) f32
    x_bf = x_ref[...].astype(jnp.bfloat16)          # in-kernel cast: no HBM pass
    acc = jax.lax.dot_general(                      # contract over C -> (thw, Np)
        x_bf, w_ref[...],
        dimension_numbers=(((0,), (0,)), ((), ())),
        preferred_element_type=jnp.float32)
    o_ref[...] = (acc + b_ref[...]).astype(o_ref.dtype)


def conv1x1_head(x3d, w_kn, b_row, *, thw):
    """x3d: (B, C, HWp) f32, w_kn: (C, Np) bf16, b_row: (1, Np) f32 -> (B, HWp, Np) f32."""
    B, C, HWp = x3d.shape
    Kc, Np = w_kn.shape
    assert Kc == C and HWp % thw == 0
    grid = (B, HWp // thw)

    cost = pl.CostEstimate(
        flops=2 * B * HWp * C * Np,
        transcendentals=0,
        bytes_accessed=int(x3d.size) * x3d.dtype.itemsize
        + int(w_kn.size) * w_kn.dtype.itemsize
        + int(b_row.size) * b_row.dtype.itemsize
        + B * HWp * Np * 4,
    )

    return pl.pallas_call(
        _conv1x1_kernel,
        out_shape=jax.ShapeDtypeStruct((B, HWp, Np), jnp.float32),
        grid_spec=pltpu.PrefetchScalarGridSpec(
            num_scalar_prefetch=0,
            grid=grid,
            in_specs=[
                pl.BlockSpec((None, C, thw), lambda b, i: (b, 0, i)),
                pl.BlockSpec((C, Np), lambda b, i: (0, 0)),
                pl.BlockSpec((1, Np), lambda b, i: (0, 0)),
            ],
            out_specs=pl.BlockSpec((None, thw, Np), lambda b, i: (b, i, 0)),
        ),
        compiler_params=pltpu.CompilerParams(
            dimension_semantics=("parallel", "parallel")),
        cost_estimate=cost,
    )(x3d, w_kn, b_row)


def prepare_landmark_params(weight_oc_ic, bias_oc):
    """One-time parameter prep.

    weight_oc_ic: (out_ch, in_ch) = (A*212, C)  (1x1 conv kernel squeezed)
    bias_oc     : (out_ch,)
    Returns (w_kn_bf16 (C, Np), bias_row_f32 (1, Np)) with Np = round_up(A*212, 128).
    """
    n_out, _ = weight_oc_ic.shape
    n_pad = _round_up(n_out, _LANE)
    w_kn = jnp.transpose(weight_oc_ic).astype(jnp.bfloat16)        # (C, N)
    w_kn = jnp.pad(w_kn, ((0, 0), (0, n_pad - n_out)))
    b_row = jnp.pad(bias_oc.astype(jnp.float32), (0, n_pad - n_out)).reshape(1, n_pad)
    return w_kn, b_row


def landmark_head_forward(x_nchw, w_kn, b_row, num_anchors, *, max_hw_tile=1024):
    """Replicates LandmarkHead.forward.

    x_nchw : (B, C, H, W) f32
    w_kn   : (C, Np) bf16  (from prepare_landmark_params)
    b_row  : (1, Np) f32
    returns: (B, H*W*num_anchors, 212) f32
    """
    B, C, H, W = x_nchw.shape
    N = num_anchors * 212
    HW = H * W

    thw = _choose_hw_tile(HW, B, max_hw_tile)
    HWp = _round_up(HW, thw)

    x3d = x_nchw.reshape(B, C, HW)            # free reshape; permute fused in-kernel
    if HWp != HW:
        x3d = jnp.pad(x3d, ((0, 0), (0, 0), (0, HWp - HW)))

    out = conv1x1_head(x3d, w_kn, b_row, thw=thw)     # (B, HWp, Np)
    out = out[:, :HW, :N]                              # no-op if nothing padded
    return out.reshape(B, HW * num_anchors, 212)


if __name__ == "__main__":
    def run_case(B, C, H, W, A, key):
        out_ch = A * 212
        kx, kw, kb = jax.random.split(key, 3)
        x = jax.random.normal(kx, (B, C, H, W), dtype=jnp.float32)
        bound = 1.0 / (C ** 0.5)
        weight = jax.random.uniform(kw, (out_ch, C), jnp.float32, -bound, bound)
        bias = jax.random.uniform(kb, (out_ch,), jnp.float32, -bound, bound)

        w_kn, b_row = prepare_landmark_params(weight, bias)
        out = jax.block_until_ready(landmark_head_forward(x, w_kn, b_row, A))

        # Plain-JAX reference (f32): 1x1 conv == einsum over channels + same reshape.
        ref = jnp.einsum("bchw,oc->bhwo", x, weight) + bias
        ref = ref.reshape(B, H * W * A, 212)

        assert out.shape == ref.shape, (out.shape, ref.shape)
        assert jnp.allclose(out, ref, atol=3e-2, rtol=3e-2), float(
            jnp.max(jnp.abs(out - ref)))

    key = jax.random.PRNGKey(0)
    k1, k2 = jax.random.split(key)
    run_case(2, 64, 16, 16, 2, k1)   # aligned HW (no padding), N=424 -> Np=512
    run_case(1, 32, 13, 13, 3, k2)   # ragged HW (169 -> 256), N=636 -> Np=640
    print("KERNEL_OK")
</pallas_src>

<mosaic_0001>
module attributes {stable_mosaic.version = 11 : i64} {
  func.func @_conv1x1_kernel(%arg0: i32, %arg1: i32, %arg2: memref<1x64x256xf32, #tpu.memory_space<vmem>>, %arg3: memref<64x512xbf16, #tpu.memory_space<vmem>>, %arg4: memref<1x512xf32, #tpu.memory_space<vmem>>, %arg5: memref<1x256x512xf32, #tpu.memory_space<vmem>>) attributes {dimension_semantics = [#tpu.dimension_semantics<parallel>, #tpu.dimension_semantics<parallel>], iteration_bounds = array<i64: 2, 1>, scalar_prefetch = 0 : i64, scratch_operands = 0 : i64, tpu.core_type = #tpu.core_type<tc>, window_params = [{transform_indices = @transform_0, window_bounds = array<i64: 1, 64, 256>}, {pipeline_mode = #tpu.pipeline_mode<synchronous>, transform_indices = @transform_1, window_bounds = array<i64: 64, 512>}, {pipeline_mode = #tpu.pipeline_mode<synchronous>, transform_indices = @transform_2, window_bounds = array<i64: 1, 512>}, {transform_indices = @transform_3, window_bounds = array<i64: 1, 256, 512>}]} {
    %c0 = arith.constant 0 : index
    %c0_0 = arith.constant 0 : index
    %c0_1 = arith.constant 0 : index
    %0 = vector.load %arg2[%c0, %c0_0, %c0_1] : memref<1x64x256xf32, #tpu.memory_space<vmem>>, vector<1x64x256xf32>
    %1 = vector.shape_cast %0 : vector<1x64x256xf32> to vector<64x256xf32>
    %2 = arith.truncf %1 : vector<64x256xf32> to vector<64x256xbf16>
    %c0_2 = arith.constant 0 : index
    %c0_3 = arith.constant 0 : index
    %3 = vector.load %arg3[%c0_2, %c0_3] : memref<64x512xbf16, #tpu.memory_space<vmem>>, vector<64x512xbf16>
    %cst = arith.constant dense<0.000000e+00> : vector<256x512xf32>
    %4 = tpu.matmul %2, %3, %cst {dimension_numbers = #tpu.dot_dimension_numbers<[0], [0], [1], [1], [0, 1, 1, 1], [], []>} : vector<64x256xbf16>, vector<64x512xbf16>, vector<256x512xf32> -> vector<256x512xf32>
    %c0_4 = arith.constant 0 : index
    %c0_5 = arith.constant 0 : index
    %5 = vector.load %arg4[%c0_4, %c0_5] : memref<1x512xf32, #tpu.memory_space<vmem>>, vector<1x512xf32>
    %6 = vector.broadcast %5 : vector<1x512xf32> to vector<256x512xf32>
    %7 = arith.addf %4, %6 : vector<256x512xf32>
    %c0_6 = arith.constant 0 : index
    %c0_7 = arith.constant 0 : index
    %c0_8 = arith.constant 0 : index
    %8 = vector.load %arg5[%c0_6, %c0_7, %c0_8] : memref<1x256x512xf32, #tpu.memory_space<vmem>>, vector<1x256x512xf32>
    %9 = vector.shape_cast %8 : vector<1x256x512xf32> to vector<256x512xf32>
    %10 = vector.shape_cast %7 : vector<256x512xf32> to vector<1x256x512xf32>
    tpu.vector_store %arg5[%c0_6, %c0_7, %c0_8], %10 {strides = array<i32>} : memref<1x256x512xf32, #tpu.memory_space<vmem>>, vector<1x256x512xf32>,
    return
  }
  func.func @transform_0(%arg0: i32, %arg1: i32) -> (i32, i32, i32) {
    %c0_i32 = arith.constant 0 : i32
    %c0_i32_0 = arith.constant 0 : i32
    return %arg0, %c0_i32, %arg1 : i32, i32, i32
  }
  func.func @transform_1(%arg0: i32, %arg1: i32) -> (i32, i32) {
    %c0_i32 = arith.constant 0 : i32
    %c0_i32_0 = arith.constant 0 : i32
    %c0_i32_1 = arith.constant 0 : i32
    return %c0_i32, %c0_i32_0 : i32, i32
  }
  func.func @transform_2(%arg0: i32, %arg1: i32) -> (i32, i32) {
    %c0_i32 = arith.constant 0 : i32
    %c0_i32_0 = arith.constant 0 : i32
    %c0_i32_1 = arith.constant 0 : i32
    return %c0_i32, %c0_i32_0 : i32, i32
  }
  func.func @transform_3(%arg0: i32, %arg1: i32) -> (i32, i32, i32) {
    %c0_i32 = arith.constant 0 : i32
    %c0_i32_0 = arith.constant 0 : i32
    return %arg0, %arg1, %c0_i32 : i32, i32, i32
  }
}

</mosaic_0001>

<bundles_post_ra>
// kernel: tpu_custom_call.1
= control target key start
LH: loop header
LB: loop body
LE: loop exit
PB: predicated region body
PF: predicated region fallthrough
CT: control target
= control target key end

     0   :  { %8 = vsyncpa [#allocation3], 0  ;;  %s1997_s0 = inlined_call_operand.hbm [shape: f32[2,64,256], index: 0, kind: input, shape index: {}]   ;;  %s1998_s1 = inlined_call_operand.hbm [shape: bf16[64,512], index: 1, kind: input, shape index: {}]   ;;  %s1999_s2 = inlined_call_operand.vmem [shape: f32[1,512], index: 2, kind: input, shape index: {}]   ;;  %s2000_s3 = inlined_call_operand.hbm [shape: f32[2,256,512], index: 3, kind: output, shape index: {}]  }
   0x1   :  { %10 = vsyncpa [#allocation3 + $0x1], 0 }
   0x2   :  { %11 = vsyncpa [#allocation6], 0 }
   0x3   :  { %12 = vsyncpa [#allocation4], 0 }
   0x4   :  { %14 = vsyncpa [#allocation4 + $0x1], 0  ;;  %s1419_s12 = smov 0   ;;  %s1421_s13 = smov 0  }
   0x5   :  { %s1423_s14 = smov 0   ;;  %s1425_s15 = smov 0  }
   0x6   :  { %s1427_s16 = smov 0   ;;  %s1429_s17 = smov 0  }
   0x7 LB: > { %s1076_s18 = sadd.s32 4294967295, %s1389_s17   ;;  %s1077_s19 = sadd.s32 4294967294, %s1389_s17   ;;  %s1389_s17 = sphi %s1429_s17, %s20_s17   ;;  %s1385_s16 = sphi %s1427_s16, %s2024_s16   ;;  %s1381_s15 = sphi %s1425_s15, %s2023_s15   ;;  %s1377_s14 = sphi %s1423_s14, %s2022_s14   ;;  %s1373_s13 = sphi %s1421_s13, %s2021_s13   ;;  %s1369_s12 = sphi %s1419_s12, %s2020_s12  }
   0x8   : > { %p54_p0 = scmp.ne.s32.totalorder %s1373_s13, %s1369_s12  ;;  %p1453_p1 = scmp.eq.s32.totalorder %s1076_s18, 0 }
   0x9   : > { %p1457_p2 = scmp.eq.s32.totalorder %s1076_s18, 1  ;;  %p128_p3 = scmp.eq.s32.totalorder %s1077_s19, 1 }
   0xa   : > { %s2005_s20 = scalar_select %p1453_p1, 1, 0 }
   0xb   : > { %s2006_s21 = scalar_select %p1457_p2, 1, 0 }
   0xc   : > { %p1463_p4 = por %p1453_p1, %p54_p0  ;;  %p1078_p5 = scmp.ge.s32.totalorder %s1389_s17, 1 }
   0xd   : > { %p1468_p6 = por %p128_p3, %p54_p0  ;;  %p135_p7 = scmp.lt.s32.totalorder %s1389_s17, 3 }
   0xe   : > { %s2007_s22 = scalar_select %p1463_p4, 1, 0 }
   0xf   : > { %s2008_s23 = scalar_select %p1468_p6, 1, 0 }
  0x10   : > { %p1473_p8 = pnand %p1078_p5, %p135_p7  ;;  %s1391_s25 = smov [#allocation5]  }
  0x11   : > { %s147_s26 = sshll.u32 %s1391_s25, 4  ;;  %s32_s28 = sadd.s32 1, %s1385_s16  ;;  %s148_s26 = int_to_ptr.vmem [resolvable:$true] %s147_s26 }
  0x12   : > { %s2009_s24 = scalar_select %p1473_p8, 1, 0 }
  0x13   : > { %p1151_p9 = pneg %p1473_p8  ;;  %s1245_s4 = scalar_lea.hbm %s1998_s1, 2048 }
  0x14   : > { %p1246_p12 = scmp.ne.s32.totalorder %s1998_s1, %s1245_s4  ;;  %p1252_p5 = scmp.lt.u32.totalorder %s1245_s4, %s1998_s1 }
  0x15   : > { %p1482_p11 = pnand %p1151_p9, %p1453_p1 }
  0x17   : > { %p1247_p13 = pneg %p1482_p11 }
  0x19   : > { %p1248_p0 = pnand %p1247_p13, %p1246_p12 }
  0x1b   : > { %p1249_p3 = pneg %p1248_p0 }
  0x1d   : > { %p1254_p7 = pnand %p1252_p5, %p1249_p3 }
  0x1f   : > { %1257 = shalt.err (!%p1254_p7)
}
  0x20   : > { %s1258_s9 = scalar_lea.vmem %s148_s26, 2048  ;;  %p1266_p1 = scmp.lt.s32.totalorder %s148_s26, %s148_s26 }
  0x21   : > { %p1259_p9 = scmp.ne.s32.totalorder %s148_s26, %s1258_s9  ;;  %p1267_p4 = scmp.lt.s32.totalorder %s1258_s9, %s1258_s9 }
  0x23   : > { %p1261_p10 = pnand %p1259_p9, %p1247_p13  ;;  %p1268_p8 = por %p1267_p4, %p1266_p1 }
  0x25   : > { %p1262_p6 = pneg %p1261_p10 }
  0x27   : > { %p1269_p2 = pnand %p1268_p8, %p1262_p6 }
  0x29   : > { %1272 = shalt.err (!%p1269_p2)
}
  0x2a   : > { %s1392_s10 = smov 256   ;;  %s1393_s11 = smov 16  }
  0x2b   : > { %1154 = dma.hbm_to_vmem [thread:$0]  (!%p1482_p11), %s1998_s1, 2048, %s148_s26, [#allocation6], %s1392_s10, %s1392_s10, %s1393_s11  }
  0x2c   : > { %p34_p1 = scmp.ge.s32.totalorder %s32_s28, 2  ;;  %s41_s25 = sadd.s32 1, %s1377_s14 }
  0x2d   : > { %p48_p2 = scmp.ne.s32.totalorder %s1377_s14, %s1373_s13  ;;  %p49_p4 = scmp.eq.s32.totalorder %s1389_s17, 0 }
  0x2e   : > { %s2026_s28 = smov (%p34_p1, %s32_s28), 0  ;;  %p2012_p8 = scmp.ne.s32.totalorder %s2006_s21, 0 }
  0x2f   : > { %p1512_p6 = por %p49_p4, %p48_p2  ;;  %s36_s30 = ssub.s32 %s1385_s16, %s2026_s28 }
  0x30   : > { %p1518_p10 = por %p2012_p8, %p48_p2  ;;  %p1164_p12 = scmp.lt.s32.totalorder %s1389_s17, 2 }
  0x31   : > { %p39_p11 = scmp.eq.s32.totalorder %s36_s30, 0  ;;  %s164_s26 = sand.u32 1, %s1377_s14  }
  0x32   : > { %s1081_s4 = sshll.u32 %s164_s26, 7  ;;  %s1141_s6 = sshll.u32 %s1385_s16, 11 }
  0x33   : > { %s1527_s5 = scalar_select %p39_p11, %s1377_s14, %s41_s25  }
  0x34   : > { %s1533_s9 = scalar_lea.hbm %s1997_s0, %s1141_s6  ;;  %s168_s21 = scalar_lea.vmem [#allocation2], %s1081_s4 }
  0x35   : > { %s177_s18 = sshll.u32 %s168_s21, 4  ;;  %p1539_p13 = pnand %p1164_p12, %p1512_p6  ;;  %s1535_s18 = int_to_ptr.vmem [resolvable:$true] %s177_s18 }
  0x36   : > { %s1543_s25 = scalar_lea.sflag [#allocation3], %s164_s26  ;;  %s1273_s30 = scalar_lea.hbm %s1533_s9, 2048 }
  0x37   : > { %p1274_p0 = scmp.ne.s32.totalorder %s1533_s9, %s1273_s30  ;;  %p1275_p3 = pneg %p1539_p13 }
  0x38   : > { %s1278_s29 = scalar_lea.hbm %s1997_s0, 4096  ;;  %p1279_p9 = scmp.lt.u32.totalorder %s1533_s9, %s1997_s0 }
  0x39   : > { %p1276_p5 = pnand %p1275_p3, %p1274_p0  ;;  %p1280_p1 = scmp.lt.u32.totalorder %s1278_s29, %s1273_s30 }
  0x3a   : > { %p1282_p4 = scmp.lt.u32.totalorder %s1273_s30, %s1533_s9 }
  0x3b   : > { %p1277_p7 = pneg %p1276_p5  ;;  %p1281_p2 = por %p1280_p1, %p1279_p9 }
  0x3d   : > { %p1283_p6 = por %p1282_p4, %p1281_p2 }
  0x3f   : > { %p1284_p8 = pnand %p1283_p6, %p1277_p7 }
  0x41   : > { %1287 = shalt.err (!%p1284_p8)
}
  0x42   : > { %s1288_s26 = scalar_lea.vmem %s1535_s18, 2048  ;;  %s1394_s21 = smov [#allocation2]  }
  0x43   : > { %p1289_p12 = scmp.ne.s32.totalorder %s1535_s18, %s1288_s26  ;;  %s1293_s4 = sshll.u32 %s1394_s21, 4  ;;  %s1294_s4 = int_to_ptr.vmem [resolvable:$false] %s1293_s4 }
  0x44   : > { %s1295_s6 = scalar_lea.vmem %s1294_s4, 4096  ;;  %p1296_p5 = scmp.lt.s32.totalorder %s1535_s18, %s1294_s4 }
  0x45   : > { %p1291_p11 = pnand %p1289_p12, %p1275_p3  ;;  %p1297_p9 = scmp.lt.s32.totalorder %s1295_s6, %s1288_s26 }
  0x47   : > { %p1292_p0 = pneg %p1291_p11  ;;  %p1298_p1 = por %p1297_p9, %p1296_p5 }
  0x49   : > { %p1299_p2 = pnand %p1298_p1, %p1292_p0 }
  0x4b   : > { %1302 = shalt.err (!%p1299_p2)
}
  0x4c   : > { %1158 = dma.hbm_to_vmem [thread:$0]  (!%p1539_p13), %s1533_s9, 2048, %s1535_s18, %s1543_s25, %s1392_s10, %s1392_s10, %s1393_s11  }
  0x4d   : > { %p2015_p3 = scmp.ne.s32.totalorder %s2009_s24, 0 }
  0x4e   : > { %s1577_s30 = sand.u32 (!%p2015_p3), 1, %s1373_s13   ;;  %p2016_p7 = scmp.ne.s32.totalorder (!%p2015_p3), %s2007_s22, 0 }
  0x4f   : > { %189 = sbr.rel (%p2015_p3) target bundleno = 548 (0x224), region = 32  ;;  %s1085_s29 = sshll.u32 (!%p2015_p3), %s1577_s30, 7 }
  0x50   : > { %s192_s7 = scalar_lea.sflag (!%p2015_p3), [#allocation3], %s1577_s30  ;;  %s1581_s8 = scalar_lea.vmem (!%p2015_p3), [#allocation2], %s1085_s29 }
  0x56   : > { %1356 = dma.done.wait (%p2016_p7), %s192_s7, 2048  }
  0x57   : > { %1358 = vsyncadd (%p2016_p7), %s192_s7, 4294965248  ;;  %p2017_p13 = scmp.ne.s32.totalorder %s2005_s20, 0 }
  0x59   : > { %1360 = dma.done.wait (%p2017_p13), [#allocation6], 2048  }
  0x5a   : > { %1362 = vsyncadd (%p2017_p13), [#allocation6], 4294965248  ;;  %v1395_v0 = vmov 0   ;;  %v225_v1 = vld [vmem:[%s1581_s8] sm:$0xff]  ;;  %v227_v2 = vld [vmem:[%s1581_s8 + $0x10] sm:$0xff]  ;;  %vm399_vm0 = vcmask 523264   ;;  %v267_v57 = vlaneseq }
  0x5b   : > { %480 = vmatprep.mubr.bf16.mxu0 %v1395_v0  ;;  %673 = vmatprep.mubr.bf16.mxu1 %v1395_v0  ;;  %v229_v3 = vld [vmem:[%s1581_s8 + $0x20] sm:$0xff]  ;;  %v241_v4 = vpack.c.bf16 %v227_v2, %v225_v1  ;;  %v231_v5 = vld [vmem:[%s1581_s8 + $0x30] sm:$0xff]  ;;  %v226_v6 = vld [vmem:[%s1581_s8 + $0x8] sm:$0xff]  ;;  %s1087_s24 = sshll.u32 %s1577_s30, 10  ;;  %s1142_s11 = sshll.u32 %s1381_s15, 14 }
  0x5c   : > { %v243_v7 = vpack.c.bf16 %v231_v5, %v229_v3  ;;  %v228_v8 = vld [vmem:[%s1581_s8 + $0x18] sm:$0xff]  ;;  %v230_v9 = vld [vmem:[%s1581_s8 + $0x28] sm:$0xff]  ;;  %v233_v11 = vld [vmem:[%s1581_s8 + $0x40] sm:$0xff]  ;;  %v268_v58 = vshrl.u32 %v267_v57, 7  ;;  %s1687_s10 = scalar_lea.vmem [#allocation7], %s1087_s24  ;;  %s1938_s19 = scalar_lea.hbm %s2000_s3, %s1142_s11 }
  0x5d   : > { %287 = vxpose.xlu0.c.b16.start [1/4] (short) %v241_v4, 128  ;;  %v232_v10 = vld [vmem:[%s1581_s8 + $0x38] sm:$0xff]  ;;  %v235_v12 = vld [vmem:[%s1581_s8 + $0x50] sm:$0xff]  ;;  %v242_v13 = vpack.c.bf16 %v228_v8, %v226_v6  ;;  %v234_v14 = vld [vmem:[%s1581_s8 + $0x48] sm:$0xff]  ;;  %s979_s9 = sshll.u32 %s1687_s10, 4  ;;  %s963_s25 = scalar_lea.sflag [#allocation4], %s1577_s30  ;;  %s1940_s9 = int_to_ptr.vmem [resolvable:$true] %s979_s9 }
  0x5e   : > { %v236_v15 = vld [vmem:[%s1581_s8 + $0x58] sm:$0xff]  ;;  %v237_v16 = vld [vmem:[%s1581_s8 + $0x60] sm:$0xff]  ;;  %v239_v17 = vld [vmem:[%s1581_s8 + $0x70] sm:$0xff]  ;;  %v244_v18 = vpack.c.bf16 %v232_v10, %v230_v9  ;;  %v245_v20 = vpack.c.bf16 %v235_v12, %v233_v11  ;;  %v269_v59 = vsub.s32 0, %v268_v58  ;;  %v277_v60 = vsub.s32 2, %v268_v58  ;;  %s1303_s26 = scalar_lea.vmem %s1940_s9, 16384 }
  0x5f   : > { %303 = vxpose.xlu1.c.b16.start [1/4] (short) %v242_v13, 128  ;;  %v1221_v19 = vld [vmem:[#allocation5 + $0x4] ss:$16 sps:$4 sm:$0xff]   ;;  %v1223_v21 = vld [vmem:[#allocation5 + $0xc] ss:$16 sps:$4 sm:$0xff]   ;;  %v1225_v22 = vld [vmem:[#allocation5] ss:$16 sps:$4 sm:$0xff]   ;;  %v246_v28 = vpack.c.bf16 %v236_v15, %v234_v14  ;;  %v247_v31 = vpack.c.bf16 %v239_v17, %v237_v16  ;;  %p1304_p4 = scmp.ne.s32.totalorder %s1940_s9, %s1303_s26 }
  0x60   : > { %v1226_v23 = vld [vmem:[#allocation5 + $0x8] ss:$16 sps:$4 sm:$0xff]   ;;  %448 = vmatprep.subr.bf16.mxu0 %v1221_v19  ;;  %v1227_v24 = vld [vmem:[#allocation5 + $0x24] ss:$16 sps:$4 sm:$0xff]   ;;  %641 = vmatprep.subr.bf16.mxu1 %v1223_v21  ;;  %v1229_v27 = vld [vmem:[#allocation5 + $0x2c] ss:$16 sps:$4 sm:$0xff]  }
  0x61   : > { %288 = vxpose.xlu0.c.b16.cont [2/4] (short) %v243_v7, 128  ;;  %v238_v25 = vld [vmem:[%s1581_s8 + $0x68] sm:$0xff]  ;;  %v240_v26 = vld [vmem:[%s1581_s8 + $0x78] sm:$0xff]  ;;  %449 = vmatpush1.bf16.msra.mxu0 %v1225_v22  ;;  %v1231_v29 = vld [vmem:[#allocation5 + $0x20] ss:$16 sps:$4 sm:$0xff]   ;;  %v273_v62 = vsub.s32 1, %v268_v58  ;;  %v281_v63 = vsub.s32 3, %v268_v58  ;;  %p1305_p6 = pnand %p1304_p4, %p1518_p10 }
  0x62   : > { %642 = vmatpush1.bf16.msra.mxu1 %v1226_v23  ;;  %v1232_v30 = vld [vmem:[#allocation5 + $0x28] ss:$16 sps:$4 sm:$0xff]   ;;  %450 = vmatprep.subr.bf16.mxu0 %v1227_v24  ;;  %v1233_v32 = vld [vmem:[#allocation5 + $0x44] ss:$16 sps:$4 sm:$0xff]   ;;  %v1235_v33 = vld [vmem:[#allocation5 + $0x4c] ss:$16 sps:$4 sm:$0xff]   ;;  %v248_v35 = vpack.c.bf16 %v240_v26, %v238_v25 }
  0x63   : > { %304 = vxpose.xlu1.c.b16.cont [2/4] (short) %v244_v18, 128  ;;  %643 = vmatprep.subr.bf16.mxu1 %v1229_v27  ;;  %v1237_v34 = vld [vmem:[#allocation5 + $0x40] ss:$16 sps:$4 sm:$0xff]   ;;  %v1238_v36 = vld [vmem:[#allocation5 + $0x48] ss:$16 sps:$4 sm:$0xff]   ;;  %v1239_v37 = vld [vmem:[#allocation5 + $0x64] ss:$16 sps:$4 sm:$0xff]   ;;  %p1306_p8 = pneg %p1305_p6 }
  0x64   : > { %v1241_v38 = vld [vmem:[#allocation5 + $0x6c] ss:$16 sps:$4 sm:$0xff]   ;;  %v1243_v39 = vld [vmem:[#allocation5 + $0x60] ss:$16 sps:$4 sm:$0xff]   ;;  %v1244_v40 = vld [vmem:[#allocation5 + $0x68] ss:$16 sps:$4 sm:$0xff]  }
  0x65   : > { %289 = vxpose.xlu0.c.b16.cont [3/4] (short) %v245_v20, 128  ;;  %451 = vmatpush1.bf16.msra.mxu0 %v1231_v29  ;;  %v265_v61 = vld [vmem:[%s1999_s2] sm:$0xf]  ;;  %s1396_s21 = smov [#allocation7]  }
  0x66   : > { %644 = vmatpush1.bf16.msra.mxu1 %v1232_v30  ;;  %452 = vmatprep.subr.bf16.mxu0 %v1233_v32  ;;  %v1675_v1 = vrot.slane %v265_v61, %v269_v59  ;;  %v1677_v2 = vrot.slane %v265_v61, %v277_v60  ;;  %v1681_v3 = vrot.slane %v265_v61, %v281_v63  ;;  %s1307_s4 = sshll.u32 %s1396_s21, 4  ;;  %s1308_s4 = int_to_ptr.vmem [resolvable:$false] %s1307_s4 }
  0x67   : > { %305 = vxpose.xlu1.c.b16.cont [3/4] (short) %v246_v28, 128  ;;  %645 = vmatprep.subr.bf16.mxu1 %v1235_v33  ;;  %s1309_s6 = scalar_lea.vmem %s1308_s4, 32768  ;;  %p1310_p12 = scmp.lt.s32.totalorder %s1940_s9, %s1308_s4 }
  0x68   : > { %p1311_p11 = scmp.lt.s32.totalorder %s1309_s6, %s1303_s26 }
  0x69   : > { %290 = vxpose.xlu0.c.b16.end [4/4] (short) %v247_v31, 128  ;;  %453 = vmatpush1.bf16.msra.mxu0 %v1237_v34 }
  0x6a   : > { %646 = vmatpush1.bf16.msra.mxu1 %v1238_v36  ;;  %454 = vmatprep.subr.bf16.mxu0 %v1239_v37  ;;  %p1312_p0 = por %p1311_p11, %p1310_p12 }
  0x6b   : > { %306 = vxpose.xlu1.c.b16.end [4/4] (short) %v248_v35, 128  ;;  %647 = vmatprep.subr.bf16.mxu1 %v1241_v38 }
  0x6c   : > { %p1313_p5 = pnand %p1312_p0, %p1306_p8 }
  0x6d   : > { %455 = vmatpush1.bf16.msra.mxu0 %v1243_v39 }
  0x6e   : > { %648 = vmatpush1.bf16.msra.mxu1 %v1244_v40 }
  0xc3   : > { %v295_v41 = vpop.trf.xlu0 }
  0xc4   : > { %1104 = vmatmul.mubr.msk.bf16.vlgmr.msra.gmra.mrb[0].mxu0 %vm399_vm0, %v295_v41  ;;  %1120 = vmatmul.mubr.msk.bf16.vlgmr.msra.gmra.mrb[0].mxu1 %vm399_vm0, %v295_v41 }
  0xc5   : > { %490 = vmatprep.mubr.bf16.mxu0 %v1395_v0  ;;  %683 = vmatprep.mubr.bf16.mxu1 %v1395_v0  ;;  %v311_v49 = vpop.trf.xlu1 }
  0xc7   : > { %v296_v42 = vpop.trf.xlu0 }
  0xc9   : > { %v312_v50 = vpop.trf.xlu1 }
  0xcb   : > { %v297_v43 = vpop.trf.xlu0 }
  0xcc   : > { %1105 = vmatmul.mubr.msk.bf16.gmra.mrb[4].mxu0 %vm399_vm0, %v296_v42  ;;  %1121 = vmatmul.mubr.msk.bf16.gmra.mrb[4].mxu1 %vm399_vm0, %v296_v42 }
  0xcd   : > { %500 = vmatprep.mubr.bf16.mxu0 %v1395_v0  ;;  %693 = vmatprep.mubr.bf16.mxu1 %v1395_v0  ;;  %v313_v51 = vpop.trf.xlu1 }
  0xcf   : > { %v298_v44 = vpop.trf.xlu0 }
  0xd1   : > { %v314_v52 = vpop.trf.xlu1 }
  0xd3   : > { %v299_v45 = vpop.trf.xlu0 }
  0xd4   : > { %1106 = vmatmul.mubr.msk.bf16.gmra.mrb[8].mxu0 %vm399_vm0, %v297_v43  ;;  %1122 = vmatmul.mubr.msk.bf16.gmra.mrb[8].mxu1 %vm399_vm0, %v297_v43 }
  0xd5   : > { %510 = vmatprep.mubr.bf16.mxu0 %v1395_v0  ;;  %703 = vmatprep.mubr.bf16.mxu1 %v1395_v0  ;;  %v315_v53 = vpop.trf.xlu1 }
  0xd7   : > { %v300_v46 = vpop.trf.xlu0 }
  0xd9   : > { %v316_v54 = vpop.trf.xlu1 }
  0xdb   : > { %v301_v47 = vpop.trf.xlu0 }
  0xdc   : > { %1107 = vmatmul.mubr.msk.bf16.gmra.mrb[12].mxu0 %vm399_vm0, %v298_v44  ;;  %1123 = vmatmul.mubr.msk.bf16.gmra.mrb[12].mxu1 %vm399_vm0, %v298_v44 }
  0xdd   : > { %520 = vmatprep.mubr.bf16.mxu0 %v1395_v0  ;;  %713 = vmatprep.mubr.bf16.mxu1 %v1395_v0  ;;  %v317_v55 = vpop.trf.xlu1 }
  0xdf   : > { %v302_v48 = vpop.trf.xlu0 }
  0xe1   : > { %v318_v56 = vpop.trf.xlu1 }
  0xe4   : > { %1108 = vmatmul.mubr.msk.bf16.gmra.mrb[16].mxu0 %vm399_vm0, %v299_v45  ;;  %1124 = vmatmul.mubr.msk.bf16.gmra.mrb[16].mxu1 %vm399_vm0, %v299_v45 }
  0xe5   : > { %530 = vmatprep.mubr.bf16.mxu0 %v1395_v0  ;;  %723 = vmatprep.mubr.bf16.mxu1 %v1395_v0 }
  0xec   : > { %1109 = vmatmul.mubr.msk.bf16.gmra.mrb[20].mxu0 %vm399_vm0, %v300_v46  ;;  %1125 = vmatmul.mubr.msk.bf16.gmra.mrb[20].mxu1 %vm399_vm0, %v300_v46 }
  0xed   : > { %540 = vmatprep.mubr.bf16.mxu0 %v1395_v0  ;;  %733 = vmatprep.mubr.bf16.mxu1 %v1395_v0 }
  0xf4   : > { %1110 = vmatmul.mubr.msk.bf16.gmra.mrb[24].mxu0 %vm399_vm0, %v301_v47  ;;  %1126 = vmatmul.mubr.msk.bf16.gmra.mrb[24].mxu1 %vm399_vm0, %v301_v47 }
  0xf5   : > { %550 = vmatprep.mubr.bf16.mxu0 %v1395_v0  ;;  %743 = vmatprep.mubr.bf16.mxu1 %v1395_v0 }
  0xfc   : > { %1111 = vmatmul.mubr.msk.bf16.gmra.mrb[28].mxu0 %vm399_vm0, %v302_v48  ;;  %1127 = vmatmul.mubr.msk.bf16.gmra.mrb[28].mxu1 %vm399_vm0, %v302_v48 }
  0xfd   : > { %560 = vmatprep.mubr.bf16.mxu0 %v1395_v0  ;;  %753 = vmatprep.mubr.bf16.mxu1 %v1395_v0 }
 0x104   : > { %1112 = vmatmul.mubr.msk.bf16.gmra.mrb[32].mxu0 %vm399_vm0, %v311_v49  ;;  %1128 = vmatmul.mubr.msk.bf16.gmra.mrb[32].mxu1 %vm399_vm0, %v311_v49 }
 0x105   : > { %570 = vmatprep.mubr.bf16.mxu0 %v1395_v0  ;;  %763 = vmatprep.mubr.bf16.mxu1 %v1395_v0 }
 0x10c   : > { %1113 = vmatmul.mubr.msk.bf16.gmra.mrb[36].mxu0 %vm399_vm0, %v312_v50  ;;  %1129 = vmatmul.mubr.msk.bf16.gmra.mrb[36].mxu1 %vm399_vm0, %v312_v50 }
 0x10d   : > { %580 = vmatprep.mubr.bf16.mxu0 %v1395_v0  ;;  %773 = vmatprep.mubr.bf16.mxu1 %v1395_v0 }
 0x114   : > { %1114 = vmatmul.mubr.msk.bf16.gmra.mrb[40].mxu0 %vm399_vm0, %v313_v51  ;;  %1130 = vmatmul.mubr.msk.bf16.gmra.mrb[40].mxu1 %vm399_vm0, %v313_v51 }
 0x115   : > { %590 = vmatprep.mubr.bf16.mxu0 %v1395_v0  ;;  %783 = vmatprep.mubr.bf16.mxu1 %v1395_v0 }
 0x11c   : > { %1115 = vmatmul.mubr.msk.bf16.gmra.mrb[44].mxu0 %vm399_vm0, %v314_v52  ;;  %1131 = vmatmul.mubr.msk.bf16.gmra.mrb[44].mxu1 %vm399_vm0, %v314_v52 }
 0x11d   : > { %600 = vmatprep.mubr.bf16.mxu0 %v1395_v0  ;;  %793 = vmatprep.mubr.bf16.mxu1 %v1395_v0 }
 0x124   : > { %1116 = vmatmul.mubr.msk.bf16.gmra.mrb[48].mxu0 %vm399_vm0, %v315_v53  ;;  %1132 = vmatmul.mubr.msk.bf16.gmra.mrb[48].mxu1 %vm399_vm0, %v315_v53 }
 0x125   : > { %610 = vmatprep.mubr.bf16.mxu0 %v1395_v0  ;;  %803 = vmatprep.mubr.bf16.mxu1 %v1395_v0 }
 0x12c   : > { %1117 = vmatmul.mubr.msk.bf16.gmra.mrb[52].mxu0 %vm399_vm0, %v316_v54  ;;  %1133 = vmatmul.mubr.msk.bf16.gmra.mrb[52].mxu1 %vm399_vm0, %v316_v54 }
 0x12d   : > { %620 = vmatprep.mubr.bf16.mxu0 %v1395_v0  ;;  %813 = vmatprep.mubr.bf16.mxu1 %v1395_v0 }
 0x134   : > { %1118 = vmatmul.mubr.msk.bf16.gmra.mrb[56].mxu0 %vm399_vm0, %v317_v55  ;;  %1134 = vmatmul.mubr.msk.bf16.gmra.mrb[56].mxu1 %vm399_vm0, %v317_v55 }
 0x135   : > { %630 = vmatprep.mubr.bf16.mxu0 %v1395_v0  ;;  %823 = vmatprep.mubr.bf16.mxu1 %v1395_v0  ;;  %v1679_v0 = vrot.slane %v265_v61, %v273_v62 }
 0x13c   : > { %1119 = vmatmul.mubr.msk.bf16.gmra.mrb[60].mxu0 %vm399_vm0, %v318_v56  ;;  %1135 = vmatmul.mubr.msk.bf16.gmra.mrb[60].mxu1 %vm399_vm0, %v318_v56 }
 0x197   : > { %v482_v4 = vpop.f32.mrb[0].mxu0  ;;  %v675_v5 = vpop.f32.mrb[0].mxu1 }
 0x198   : > { %v483_v6 = vadd.f32 %v482_v4, %v1675_v1  ;;  %v676_v7 = vadd.f32 %v675_v5, %v1677_v2  ;;  %v484_v8 = vpop.f32.mrb[1].mxu0  ;;  %v677_v9 = vpop.f32.mrb[1].mxu1 }
 0x199   : > { %v485_v10 = vadd.f32 %v484_v8, %v1679_v0  ;;  %v678_v11 = vadd.f32 %v677_v9, %v1681_v3  ;;  %v486_v12 = vpop.f32.mrb[2].mxu0  ;;  %v679_v13 = vpop.f32.mrb[2].mxu1 }
 0x19a   : > { %834 = vst [vmem:[%s1687_s10] sm:$0xff] %v483_v6  ;;  %836 = vst [vmem:[%s1687_s10 + $0x10] sm:$0xff] %v676_v7  ;;  %v487_v14 = vadd.f32 %v486_v12, %v1675_v1  ;;  %v680_v15 = vadd.f32 %v679_v13, %v1677_v2  ;;  %v488_v16 = vpop.f32.mrb[3].mxu0  ;;  %v681_v17 = vpop.f32.mrb[3].mxu1 }
 0x19b   : > { %835 = vst [vmem:[%s1687_s10 + $0x8] sm:$0xff] %v485_v10  ;;  %837 = vst [vmem:[%s1687_s10 + $0x18] sm:$0xff] %v678_v11  ;;  %v489_v18 = vadd.f32 %v488_v16, %v1679_v0  ;;  %v682_v19 = vadd.f32 %v681_v17, %v1681_v3 }
 0x19c   : > { %838 = vst [vmem:[%s1687_s10 + $0x20] sm:$0xff] %v487_v14  ;;  %840 = vst [vmem:[%s1687_s10 + $0x30] sm:$0xff] %v680_v15 }
 0x19d   : > { %839 = vst [vmem:[%s1687_s10 + $0x28] sm:$0xff] %v489_v18  ;;  %841 = vst [vmem:[%s1687_s10 + $0x38] sm:$0xff] %v682_v19 }
 0x19f   : > { %v492_v20 = vpop.f32.mrb[4].mxu0  ;;  %v685_v21 = vpop.f32.mrb[4].mxu1 }
 0x1a0   : > { %v493_v22 = vadd.f32 %v492_v20, %v1675_v1  ;;  %v686_v23 = vadd.f32 %v685_v21, %v1677_v2  ;;  %v494_v24 = vpop.f32.mrb[5].mxu0  ;;  %v687_v25 = vpop.f32.mrb[5].mxu1 }
 0x1a1   : > { %v495_v26 = vadd.f32 %v494_v24, %v1679_v0  ;;  %v688_v27 = vadd.f32 %v687_v25, %v1681_v3  ;;  %v496_v28 = vpop.f32.mrb[6].mxu0  ;;  %v689_v29 = vpop.f32.mrb[6].mxu1 }
 0x1a2   : > { %842 = vst [vmem:[%s1687_s10 + $0x40] sm:$0xff] %v493_v22  ;;  %844 = vst [vmem:[%s1687_s10 + $0x50] sm:$0xff] %v686_v23  ;;  %v497_v30 = vadd.f32 %v496_v28, %v1675_v1  ;;  %v690_v31 = vadd.f32 %v689_v29, %v1677_v2  ;;  %v498_v32 = vpop.f32.mrb[7].mxu0  ;;  %v691_v33 = vpop.f32.mrb[7].mxu1 }
 0x1a3   : > { %843 = vst [vmem:[%s1687_s10 + $0x48] sm:$0xff] %v495_v26  ;;  %845 = vst [vmem:[%s1687_s10 + $0x58] sm:$0xff] %v688_v27  ;;  %v499_v34 = vadd.f32 %v498_v32, %v1679_v0  ;;  %v692_v35 = vadd.f32 %v691_v33, %v1681_v3 }
 0x1a4   : > { %846 = vst [vmem:[%s1687_s10 + $0x60] sm:$0xff] %v497_v30  ;;  %848 = vst [vmem:[%s1687_s10 + $0x70] sm:$0xff] %v690_v31 }
 0x1a5   : > { %847 = vst [vmem:[%s1687_s10 + $0x68] sm:$0xff] %v499_v34  ;;  %849 = vst [vmem:[%s1687_s10 + $0x78] sm:$0xff] %v692_v35 }
 0x1a7   : > { %v502_v36 = vpop.f32.mrb[8].mxu0  ;;  %v695_v37 = vpop.f32.mrb[8].mxu1 }
 0x1a8   : > { %v503_v38 = vadd.f32 %v502_v36, %v1675_v1  ;;  %v696_v39 = vadd.f32 %v695_v37, %v1677_v2  ;;  %v504_v40 = vpop.f32.mrb[9].mxu0  ;;  %v697_v41 = vpop.f32.mrb[9].mxu1 }
 0x1a9   : > { %v505_v42 = vadd.f32 %v504_v40, %v1679_v0  ;;  %v698_v43 = vadd.f32 %v697_v41, %v1681_v3  ;;  %v506_v44 = vpop.f32.mrb[10].mxu0  ;;  %v699_v45 = vpop.f32.mrb[10].mxu1 }
 0x1aa   : > { %850 = vst [vmem:[%s1687_s10 + $0x80] sm:$0xff] %v503_v38  ;;  %852 = vst [vmem:[%s1687_s10 + $0x90] sm:$0xff] %v696_v39  ;;  %v507_v46 = vadd.f32 %v506_v44, %v1675_v1  ;;  %v700_v47 = vadd.f32 %v699_v45, %v1677_v2  ;;  %v508_v48 = vpop.f32.mrb[11].mxu0  ;;  %v701_v49 = vpop.f32.mrb[11].mxu1 }
 0x1ab   : > { %851 = vst [vmem:[%s1687_s10 + $0x88] sm:$0xff] %v505_v42  ;;  %853 = vst [vmem:[%s1687_s10 + $0x98] sm:$0xff] %v698_v43  ;;  %v509_v50 = vadd.f32 %v508_v48, %v1679_v0  ;;  %v702_v51 = vadd.f32 %v701_v49, %v1681_v3 }
 0x1ac   : > { %854 = vst [vmem:[%s1687_s10 + $0xa0] sm:$0xff] %v507_v46  ;;  %856 = vst [vmem:[%s1687_s10 + $0xb0] sm:$0xff] %v700_v47 }
 0x1ad   : > { %855 = vst [vmem:[%s1687_s10 + $0xa8] sm:$0xff] %v509_v50  ;;  %857 = vst [vmem:[%s1687_s10 + $0xb8] sm:$0xff] %v702_v51 }
 0x1af   : > { %v512_v52 = vpop.f32.mrb[12].mxu0  ;;  %v705_v53 = vpop.f32.mrb[12].mxu1 }
 0x1b0   : > { %v513_v54 = vadd.f32 %v512_v52, %v1675_v1  ;;  %v706_v55 = vadd.f32 %v705_v53, %v1677_v2  ;;  %v514_v56 = vpop.f32.mrb[13].mxu0  ;;  %v707_v57 = vpop.f32.mrb[13].mxu1 }
 0x1b1   : > { %v515_v58 = vadd.f32 %v514_v56, %v1679_v0  ;;  %v708_v59 = vadd.f32 %v707_v57, %v1681_v3  ;;  %v516_v60 = vpop.f32.mrb[14].mxu0  ;;  %v709_v61 = vpop.f32.mrb[14].mxu1 }
 0x1b2   : > { %858 = vst [vmem:[%s1687_s10 + $0xc0] sm:$0xff] %v513_v54  ;;  %860 = vst [vmem:[%s1687_s10 + $0xd0] sm:$0xff] %v706_v55  ;;  %v517_v62 = vadd.f32 %v516_v60, %v1675_v1  ;;  %v710_v63 = vadd.f32 %v709_v61, %v1677_v2  ;;  %v518_v4 = vpop.f32.mrb[15].mxu0  ;;  %v711_v5 = vpop.f32.mrb[15].mxu1 }
 0x1b3   : > { %859 = vst [vmem:[%s1687_s10 + $0xc8] sm:$0xff] %v515_v58  ;;  %861 = vst [vmem:[%s1687_s10 + $0xd8] sm:$0xff] %v708_v59  ;;  %v519_v6 = vadd.f32 %v518_v4, %v1679_v0  ;;  %v712_v7 = vadd.f32 %v711_v5, %v1681_v3 }
 0x1b4   : > { %862 = vst [vmem:[%s1687_s10 + $0xe0] sm:$0xff] %v517_v62  ;;  %864 = vst [vmem:[%s1687_s10 + $0xf0] sm:$0xff] %v710_v63 }
 0x1b5   : > { %863 = vst [vmem:[%s1687_s10 + $0xe8] sm:$0xff] %v519_v6  ;;  %865 = vst [vmem:[%s1687_s10 + $0xf8] sm:$0xff] %v712_v7 }
 0x1b7   : > { %v522_v8 = vpop.f32.mrb[16].mxu0  ;;  %v715_v9 = vpop.f32.mrb[16].mxu1 }
 0x1b8   : > { %v523_v10 = vadd.f32 %v522_v8, %v1675_v1  ;;  %v716_v11 = vadd.f32 %v715_v9, %v1677_v2  ;;  %v524_v12 = vpop.f32.mrb[17].mxu0  ;;  %v717_v13 = vpop.f32.mrb[17].mxu1 }
 0x1b9   : > { %v525_v14 = vadd.f32 %v524_v12, %v1679_v0  ;;  %v718_v15 = vadd.f32 %v717_v13, %v1681_v3  ;;  %v526_v16 = vpop.f32.mrb[18].mxu0  ;;  %v719_v17 = vpop.f32.mrb[18].mxu1 }
 0x1ba   : > { %866 = vst [vmem:[%s1687_s10 + $0x100] sm:$0xff] %v523_v10  ;;  %868 = vst [vmem:[%s1687_s10 + $0x110] sm:$0xff] %v716_v11  ;;  %v527_v18 = vadd.f32 %v526_v16, %v1675_v1  ;;  %v720_v19 = vadd.f32 %v719_v17, %v1677_v2  ;;  %v528_v20 = vpop.f32.mrb[19].mxu0  ;;  %v721_v21 = vpop.f32.mrb[19].mxu1 }
 0x1bb   : > { %867 = vst [vmem:[%s1687_s10 + $0x108] sm:$0xff] %v525_v14  ;;  %869 = vst [vmem:[%s1687_s10 + $0x118] sm:$0xff] %v718_v15  ;;  %v529_v22 = vadd.f32 %v528_v20, %v1679_v0  ;;  %v722_v23 = vadd.f32 %v721_v21, %v1681_v3 }
 0x1bc   : > { %870 = vst [vmem:[%s1687_s10 + $0x120] sm:$0xff] %v527_v18  ;;  %872 = vst [vmem:[%s1687_s10 + $0x130] sm:$0xff] %v720_v19 }
 0x1bd   : > { %871 = vst [vmem:[%s1687_s10 + $0x128] sm:$0xff] %v529_v22  ;;  %873 = vst [vmem:[%s1687_s10 + $0x138] sm:$0xff] %v722_v23 }
 0x1bf   : > { %v532_v24 = vpop.f32.mrb[20].mxu0  ;;  %v725_v25 = vpop.f32.mrb[20].mxu1 }
 0x1c0   : > { %v533_v26 = vadd.f32 %v532_v24, %v1675_v1  ;;  %v726_v27 = vadd.f32 %v725_v25, %v1677_v2  ;;  %v534_v28 = vpop.f32.mrb[21].mxu0  ;;  %v727_v29 = vpop.f32.mrb[21].mxu1 }
 0x1c1   : > { %v535_v30 = vadd.f32 %v534_v28, %v1679_v0  ;;  %v728_v31 = vadd.f32 %v727_v29, %v1681_v3  ;;  %v536_v32 = vpop.f32.mrb[22].mxu0  ;;  %v729_v33 = vpop.f32.mrb[22].mxu1 }
 0x1c2   : > { %874 = vst [vmem:[%s1687_s10 + $0x140] sm:$0xff] %v533_v26  ;;  %876 = vst [vmem:[%s1687_s10 + $0x150] sm:$0xff] %v726_v27  ;;  %v537_v34 = vadd.f32 %v536_v32, %v1675_v1  ;;  %v730_v35 = vadd.f32 %v729_v33, %v1677_v2  ;;  %v538_v36 = vpop.f32.mrb[23].mxu0  ;;  %v731_v37 = vpop.f32.mrb[23].mxu1 }
 0x1c3   : > { %875 = vst [vmem:[%s1687_s10 + $0x148] sm:$0xff] %v535_v30  ;;  %877 = vst [vmem:[%s1687_s10 + $0x158] sm:$0xff] %v728_v31  ;;  %v539_v38 = vadd.f32 %v538_v36, %v1679_v0  ;;  %v732_v39 = vadd.f32 %v731_v37, %v1681_v3 }
 0x1c4   : > { %878 = vst [vmem:[%s1687_s10 + $0x160] sm:$0xff] %v537_v34  ;;  %880 = vst [vmem:[%s1687_s10 + $0x170] sm:$0xff] %v730_v35 }
 0x1c5   : > { %879 = vst [vmem:[%s1687_s10 + $0x168] sm:$0xff] %v539_v38  ;;  %881 = vst [vmem:[%s1687_s10 + $0x178] sm:$0xff] %v732_v39 }
 0x1c7   : > { %v542_v40 = vpop.f32.mrb[24].mxu0  ;;  %v735_v41 = vpop.f32.mrb[24].mxu1 }
 0x1c8   : > { %v543_v42 = vadd.f32 %v542_v40, %v1675_v1  ;;  %v736_v43 = vadd.f32 %v735_v41, %v1677_v2  ;;  %v544_v44 = vpop.f32.mrb[25].mxu0  ;;  %v737_v45 = vpop.f32.mrb[25].mxu1 }
 0x1c9   : > { %v545_v46 = vadd.f32 %v544_v44, %v1679_v0  ;;  %v738_v47 = vadd.f32 %v737_v45, %v1681_v3  ;;  %v546_v48 = vpop.f32.mrb[26].mxu0  ;;  %v739_v49 = vpop.f32.mrb[26].mxu1 }
 0x1ca   : > { %882 = vst [vmem:[%s1687_s10 + $0x180] sm:$0xff] %v543_v42  ;;  %884 = vst [vmem:[%s1687_s10 + $0x190] sm:$0xff] %v736_v43  ;;  %v547_v50 = vadd.f32 %v546_v48, %v1675_v1  ;;  %v740_v51 = vadd.f32 %v739_v49, %v1677_v2  ;;  %v548_v52 = vpop.f32.mrb[27].mxu0  ;;  %v741_v53 = vpop.f32.mrb[27].mxu1 }
 0x1cb   : > { %883 = vst [vmem:[%s1687_s10 + $0x188] sm:$0xff] %v545_v46  ;;  %885 = vst [vmem:[%s1687_s10 + $0x198] sm:$0xff] %v738_v47  ;;  %v549_v54 = vadd.f32 %v548_v52, %v1679_v0  ;;  %v742_v55 = vadd.f32 %v741_v53, %v1681_v3 }
 0x1cc   : > { %886 = vst [vmem:[%s1687_s10 + $0x1a0] sm:$0xff] %v547_v50  ;;  %888 = vst [vmem:[%s1687_s10 + $0x1b0] sm:$0xff] %v740_v51 }
 0x1cd   : > { %887 = vst [vmem:[%s1687_s10 + $0x1a8] sm:$0xff] %v549_v54  ;;  %889 = vst [vmem:[%s1687_s10 + $0x1b8] sm:$0xff] %v742_v55 }
 0x1cf   : > { %v552_v56 = vpop.f32.mrb[28].mxu0  ;;  %v745_v57 = vpop.f32.mrb[28].mxu1 }
 0x1d0   : > { %v553_v58 = vadd.f32 %v552_v56, %v1675_v1  ;;  %v746_v59 = vadd.f32 %v745_v57, %v1677_v2  ;;  %v554_v60 = vpop.f32.mrb[29].mxu0  ;;  %v747_v61 = vpop.f32.mrb[29].mxu1 }
 0x1d1   : > { %v555_v62 = vadd.f32 %v554_v60, %v1679_v0  ;;  %v748_v63 = vadd.f32 %v747_v61, %v1681_v3  ;;  %v556_v4 = vpop.f32.mrb[30].mxu0  ;;  %v749_v5 = vpop.f32.mrb[30].mxu1 }
 0x1d2   : > { %890 = vst [vmem:[%s1687_s10 + $0x1c0] sm:$0xff] %v553_v58  ;;  %892 = vst [vmem:[%s1687_s10 + $0x1d0] sm:$0xff] %v746_v59  ;;  %v557_v6 = vadd.f32 %v556_v4, %v1675_v1  ;;  %v750_v7 = vadd.f32 %v749_v5, %v1677_v2  ;;  %v558_v8 = vpop.f32.mrb[31].mxu0  ;;  %v751_v9 = vpop.f32.mrb[31].mxu1 }
 0x1d3   : > { %891 = vst [vmem:[%s1687_s10 + $0x1c8] sm:$0xff] %v555_v62  ;;  %893 = vst [vmem:[%s1687_s10 + $0x1d8] sm:$0xff] %v748_v63  ;;  %v559_v10 = vadd.f32 %v558_v8, %v1679_v0  ;;  %v752_v11 = vadd.f32 %v751_v9, %v1681_v3 }
 0x1d4   : > { %894 = vst [vmem:[%s1687_s10 + $0x1e0] sm:$0xff] %v557_v6  ;;  %896 = vst [vmem:[%s1687_s10 + $0x1f0] sm:$0xff] %v750_v7 }
 0x1d5   : > { %895 = vst [vmem:[%s1687_s10 + $0x1e8] sm:$0xff] %v559_v10  ;;  %897 = vst [vmem:[%s1687_s10 + $0x1f8] sm:$0xff] %v752_v11 }
 0x1d7   : > { %v562_v12 = vpop.f32.mrb[32].mxu0  ;;  %v755_v13 = vpop.f32.mrb[32].mxu1 }
 0x1d8   : > { %v563_v14 = vadd.f32 %v562_v12, %v1675_v1  ;;  %v756_v15 = vadd.f32 %v755_v13, %v1677_v2  ;;  %v564_v16 = vpop.f32.mrb[33].mxu0  ;;  %v757_v17 = vpop.f32.mrb[33].mxu1 }
 0x1d9   : > { %v565_v18 = vadd.f32 %v564_v16, %v1679_v0  ;;  %v758_v19 = vadd.f32 %v757_v17, %v1681_v3  ;;  %v566_v20 = vpop.f32.mrb[34].mxu0  ;;  %v759_v21 = vpop.f32.mrb[34].mxu1 }
 0x1da   : > { %898 = vst [vmem:[%s1687_s10 + $0x200] sm:$0xff] %v563_v14  ;;  %900 = vst [vmem:[%s1687_s10 + $0x210] sm:$0xff] %v756_v15  ;;  %v567_v22 = vadd.f32 %v566_v20, %v1675_v1  ;;  %v760_v23 = vadd.f32 %v759_v21, %v1677_v2  ;;  %v568_v24 = vpop.f32.mrb[35].mxu0  ;;  %v761_v25 = vpop.f32.mrb[35].mxu1 }
 0x1db   : > { %899 = vst [vmem:[%s1687_s10 + $0x208] sm:$0xff] %v565_v18  ;;  %901 = vst [vmem:[%s1687_s10 + $0x218] sm:$0xff] %v758_v19  ;;  %v569_v26 = vadd.f32 %v568_v24, %v1679_v0  ;;  %v762_v27 = vadd.f32 %v761_v25, %v1681_v3 }
 0x1dc   : > { %902 = vst [vmem:[%s1687_s10 + $0x220] sm:$0xff] %v567_v22  ;;  %904 = vst [vmem:[%s1687_s10 + $0x230] sm:$0xff] %v760_v23 }
 0x1dd   : > { %903 = vst [vmem:[%s1687_s10 + $0x228] sm:$0xff] %v569_v26  ;;  %905 = vst [vmem:[%s1687_s10 + $0x238] sm:$0xff] %v762_v27 }
 0x1df   : > { %v572_v28 = vpop.f32.mrb[36].mxu0  ;;  %v765_v29 = vpop.f32.mrb[36].mxu1 }
 0x1e0   : > { %v573_v30 = vadd.f32 %v572_v28, %v1675_v1  ;;  %v766_v31 = vadd.f32 %v765_v29, %v1677_v2  ;;  %v574_v32 = vpop.f32.mrb[37].mxu0  ;;  %v767_v33 = vpop.f32.mrb[37].mxu1 }
 0x1e1   : > { %v575_v34 = vadd.f32 %v574_v32, %v1679_v0  ;;  %v768_v35 = vadd.f32 %v767_v33, %v1681_v3  ;;  %v576_v36 = vpop.f32.mrb[38].mxu0  ;;  %v769_v37 = vpop.f32.mrb[38].mxu1 }
 0x1e2   : > { %906 = vst [vmem:[%s1687_s10 + $0x240] sm:$0xff] %v573_v30  ;;  %908 = vst [vmem:[%s1687_s10 + $0x250] sm:$0xff] %v766_v31  ;;  %v577_v38 = vadd.f32 %v576_v36, %v1675_v1  ;;  %v770_v39 = vadd.f32 %v769_v37, %v1677_v2  ;;  %v578_v40 = vpop.f32.mrb[39].mxu0  ;;  %v771_v41 = vpop.f32.mrb[39].mxu1 }
 0x1e3   : > { %907 = vst [vmem:[%s1687_s10 + $0x248] sm:$0xff] %v575_v34  ;;  %909 = vst [vmem:[%s1687_s10 + $0x258] sm:$0xff] %v768_v35  ;;  %v579_v42 = vadd.f32 %v578_v40, %v1679_v0  ;;  %v772_v43 = vadd.f32 %v771_v41, %v1681_v3 }
 0x1e4   : > { %910 = vst [vmem:[%s1687_s10 + $0x260] sm:$0xff] %v577_v38  ;;  %912 = vst [vmem:[%s1687_s10 + $0x270] sm:$0xff] %v770_v39 }
 0x1e5   : > { %911 = vst [vmem:[%s1687_s10 + $0x268] sm:$0xff] %v579_v42  ;;  %913 = vst [vmem:[%s1687_s10 + $0x278] sm:$0xff] %v772_v43 }
 0x1e7   : > { %v582_v44 = vpop.f32.mrb[40].mxu0  ;;  %v775_v45 = vpop.f32.mrb[40].mxu1 }
 0x1e8   : > { %v583_v46 = vadd.f32 %v582_v44, %v1675_v1  ;;  %v776_v47 = vadd.f32 %v775_v45, %v1677_v2  ;;  %v584_v48 = vpop.f32.mrb[41].mxu0  ;;  %v777_v49 = vpop.f32.mrb[41].mxu1 }
 0x1e9   : > { %v585_v50 = vadd.f32 %v584_v48, %v1679_v0  ;;  %v778_v51 = vadd.f32 %v777_v49, %v1681_v3  ;;  %v586_v52 = vpop.f32.mrb[42].mxu0  ;;  %v779_v53 = vpop.f32.mrb[42].mxu1 }
 0x1ea   : > { %914 = vst [vmem:[%s1687_s10 + $0x280] sm:$0xff] %v583_v46  ;;  %916 = vst [vmem:[%s1687_s10 + $0x290] sm:$0xff] %v776_v47  ;;  %v587_v54 = vadd.f32 %v586_v52, %v1675_v1  ;;  %v780_v55 = vadd.f32 %v779_v53, %v1677_v2  ;;  %v588_v56 = vpop.f32.mrb[43].mxu0  ;;  %v781_v57 = vpop.f32.mrb[43].mxu1 }
 0x1eb   : > { %915 = vst [vmem:[%s1687_s10 + $0x288] sm:$0xff] %v585_v50  ;;  %917 = vst [vmem:[%s1687_s10 + $0x298] sm:$0xff] %v778_v51  ;;  %v589_v58 = vadd.f32 %v588_v56, %v1679_v0  ;;  %v782_v59 = vadd.f32 %v781_v57, %v1681_v3 }
 0x1ec   : > { %918 = vst [vmem:[%s1687_s10 + $0x2a0] sm:$0xff] %v587_v54  ;;  %920 = vst [vmem:[%s1687_s10 + $0x2b0] sm:$0xff] %v780_v55 }
 0x1ed   : > { %919 = vst [vmem:[%s1687_s10 + $0x2a8] sm:$0xff] %v589_v58  ;;  %921 = vst [vmem:[%s1687_s10 + $0x2b8] sm:$0xff] %v782_v59 }
 0x1ef   : > { %v592_v60 = vpop.f32.mrb[44].mxu0  ;;  %v785_v61 = vpop.f32.mrb[44].mxu1 }
 0x1f0   : > { %v593_v62 = vadd.f32 %v592_v60, %v1675_v1  ;;  %v786_v63 = vadd.f32 %v785_v61, %v1677_v2  ;;  %v594_v4 = vpop.f32.mrb[45].mxu0  ;;  %v787_v5 = vpop.f32.mrb[45].mxu1 }
 0x1f1   : > { %v595_v6 = vadd.f32 %v594_v4, %v1679_v0  ;;  %v788_v7 = vadd.f32 %v787_v5, %v1681_v3  ;;  %v596_v8 = vpop.f32.mrb[46].mxu0  ;;  %v789_v9 = vpop.f32.mrb[46].mxu1 }
 0x1f2   : > { %922 = vst [vmem:[%s1687_s10 + $0x2c0] sm:$0xff] %v593_v62  ;;  %924 = vst [vmem:[%s1687_s10 + $0x2d0] sm:$0xff] %v786_v63  ;;  %v597_v10 = vadd.f32 %v596_v8, %v1675_v1  ;;  %v790_v11 = vadd.f32 %v789_v9, %v1677_v2  ;;  %v598_v12 = vpop.f32.mrb[47].mxu0  ;;  %v791_v13 = vpop.f32.mrb[47].mxu1 }
 0x1f3   : > { %923 = vst [vmem:[%s1687_s10 + $0x2c8] sm:$0xff] %v595_v6  ;;  %925 = vst [vmem:[%s1687_s10 + $0x2d8] sm:$0xff] %v788_v7  ;;  %v599_v14 = vadd.f32 %v598_v12, %v1679_v0  ;;  %v792_v15 = vadd.f32 %v791_v13, %v1681_v3 }
 0x1f4   : > { %926 = vst [vmem:[%s1687_s10 + $0x2e0] sm:$0xff] %v597_v10  ;;  %928 = vst [vmem:[%s1687_s10 + $0x2f0] sm:$0xff] %v790_v11 }
 0x1f5   : > { %927 = vst [vmem:[%s1687_s10 + $0x2e8] sm:$0xff] %v599_v14  ;;  %929 = vst [vmem:[%s1687_s10 + $0x2f8] sm:$0xff] %v792_v15 }
 0x1f7   : > { %v602_v16 = vpop.f32.mrb[48].mxu0  ;;  %v795_v17 = vpop.f32.mrb[48].mxu1 }
 0x1f8   : > { %v603_v18 = vadd.f32 %v602_v16, %v1675_v1  ;;  %v796_v19 = vadd.f32 %v795_v17, %v1677_v2  ;;  %v604_v20 = vpop.f32.mrb[49].mxu0  ;;  %v797_v21 = vpop.f32.mrb[49].mxu1 }
 0x1f9   : > { %v605_v22 = vadd.f32 %v604_v20, %v1679_v0  ;;  %v798_v23 = vadd.f32 %v797_v21, %v1681_v3  ;;  %v606_v24 = vpop.f32.mrb[50].mxu0  ;;  %v799_v25 = vpop.f32.mrb[50].mxu1 }
 0x1fa   : > { %930 = vst [vmem:[%s1687_s10 + $0x300] sm:$0xff] %v603_v18  ;;  %932 = vst [vmem:[%s1687_s10 + $0x310] sm:$0xff] %v796_v19  ;;  %v607_v26 = vadd.f32 %v606_v24, %v1675_v1  ;;  %v800_v27 = vadd.f32 %v799_v25, %v1677_v2  ;;  %v608_v28 = vpop.f32.mrb[51].mxu0  ;;  %v801_v29 = vpop.f32.mrb[51].mxu1 }
 0x1fb   : > { %931 = vst [vmem:[%s1687_s10 + $0x308] sm:$0xff] %v605_v22  ;;  %933 = vst [vmem:[%s1687_s10 + $0x318] sm:$0xff] %v798_v23  ;;  %v609_v30 = vadd.f32 %v608_v28, %v1679_v0  ;;  %v802_v31 = vadd.f32 %v801_v29, %v1681_v3 }
 0x1fc   : > { %934 = vst [vmem:[%s1687_s10 + $0x320] sm:$0xff] %v607_v26  ;;  %936 = vst [vmem:[%s1687_s10 + $0x330] sm:$0xff] %v800_v27 }
 0x1fd   : > { %935 = vst [vmem:[%s1687_s10 + $0x328] sm:$0xff] %v609_v30  ;;  %937 = vst [vmem:[%s1687_s10 + $0x338] sm:$0xff] %v802_v31 }
 0x1ff   : > { %v612_v32 = vpop.f32.mrb[52].mxu0  ;;  %v805_v33 = vpop.f32.mrb[52].mxu1 }
 0x200   : > { %v613_v34 = vadd.f32 %v612_v32, %v1675_v1  ;;  %v806_v35 = vadd.f32 %v805_v33, %v1677_v2  ;;  %v614_v36 = vpop.f32.mrb[53].mxu0  ;;  %v807_v37 = vpop.f32.mrb[53].mxu1 }
 0x201   : > { %v615_v38 = vadd.f32 %v614_v36, %v1679_v0  ;;  %v808_v39 = vadd.f32 %v807_v37, %v1681_v3  ;;  %v616_v40 = vpop.f32.mrb[54].mxu0  ;;  %v809_v41 = vpop.f32.mrb[54].mxu1 }
 0x202   : > { %938 = vst [vmem:[%s1687_s10 + $0x340] sm:$0xff] %v613_v34  ;;  %940 = vst [vmem:[%s1687_s10 + $0x350] sm:$0xff] %v806_v35  ;;  %v617_v42 = vadd.f32 %v616_v40, %v1675_v1  ;;  %v810_v43 = vadd.f32 %v809_v41, %v1677_v2  ;;  %v618_v44 = vpop.f32.mrb[55].mxu0  ;;  %v811_v45 = vpop.f32.mrb[55].mxu1 }
 0x203   : > { %939 = vst [vmem:[%s1687_s10 + $0x348] sm:$0xff] %v615_v38  ;;  %941 = vst [vmem:[%s1687_s10 + $0x358] sm:$0xff] %v808_v39  ;;  %v619_v46 = vadd.f32 %v618_v44, %v1679_v0  ;;  %v812_v47 = vadd.f32 %v811_v45, %v1681_v3 }
 0x204   : > { %942 = vst [vmem:[%s1687_s10 + $0x360] sm:$0xff] %v617_v42  ;;  %944 = vst [vmem:[%s1687_s10 + $0x370] sm:$0xff] %v810_v43 }
 0x205   : > { %943 = vst [vmem:[%s1687_s10 + $0x368] sm:$0xff] %v619_v46  ;;  %945 = vst [vmem:[%s1687_s10 + $0x378] sm:$0xff] %v812_v47 }
 0x207   : > { %v622_v48 = vpop.f32.mrb[56].mxu0  ;;  %v815_v49 = vpop.f32.mrb[56].mxu1 }
 0x208   : > { %v623_v50 = vadd.f32 %v622_v48, %v1675_v1  ;;  %v816_v51 = vadd.f32 %v815_v49, %v1677_v2  ;;  %v624_v52 = vpop.f32.mrb[57].mxu0  ;;  %v817_v53 = vpop.f32.mrb[57].mxu1 }
 0x209   : > { %v625_v54 = vadd.f32 %v624_v52, %v1679_v0  ;;  %v818_v55 = vadd.f32 %v817_v53, %v1681_v3  ;;  %v626_v56 = vpop.f32.mrb[58].mxu0  ;;  %v819_v57 = vpop.f32.mrb[58].mxu1 }
 0x20a   : > { %946 = vst [vmem:[%s1687_s10 + $0x380] sm:$0xff] %v623_v50  ;;  %948 = vst [vmem:[%s1687_s10 + $0x390] sm:$0xff] %v816_v51  ;;  %v627_v58 = vadd.f32 %v626_v56, %v1675_v1  ;;  %v820_v59 = vadd.f32 %v819_v57, %v1677_v2  ;;  %v628_v60 = vpop.f32.mrb[59].mxu0  ;;  %v821_v61 = vpop.f32.mrb[59].mxu1 }
 0x20b   : > { %947 = vst [vmem:[%s1687_s10 + $0x388] sm:$0xff] %v625_v54  ;;  %949 = vst [vmem:[%s1687_s10 + $0x398] sm:$0xff] %v818_v55  ;;  %v629_v62 = vadd.f32 %v628_v60, %v1679_v0  ;;  %v822_v63 = vadd.f32 %v821_v61, %v1681_v3 }
 0x20c   : > { %950 = vst [vmem:[%s1687_s10 + $0x3a0] sm:$0xff] %v627_v58  ;;  %952 = vst [vmem:[%s1687_s10 + $0x3b0] sm:$0xff] %v820_v59 }
 0x20d   : > { %951 = vst [vmem:[%s1687_s10 + $0x3a8] sm:$0xff] %v629_v62  ;;  %953 = vst [vmem:[%s1687_s10 + $0x3b8] sm:$0xff] %v822_v63 }
 0x20f   : > { %v632_v4 = vpop.f32.mrb[60].mxu0  ;;  %v825_v5 = vpop.f32.mrb[60].mxu1 }
 0x210   : > { %v633_v6 = vadd.f32 %v632_v4, %v1675_v1  ;;  %v826_v7 = vadd.f32 %v825_v5, %v1677_v2  ;;  %v634_v8 = vpop.f32.mrb[61].mxu0  ;;  %v827_v9 = vpop.f32.mrb[61].mxu1 }
 0x211   : > { %v635_v10 = vadd.f32 %v634_v8, %v1679_v0  ;;  %v828_v11 = vadd.f32 %v827_v9, %v1681_v3  ;;  %v636_v12 = vpop.f32.mrb[62].mxu0  ;;  %v829_v13 = vpop.f32.mrb[62].mxu1 }
 0x212   : > { %954 = vst [vmem:[%s1687_s10 + $0x3c0] sm:$0xff] %v633_v6  ;;  %956 = vst [vmem:[%s1687_s10 + $0x3d0] sm:$0xff] %v826_v7  ;;  %v637_v14 = vadd.f32 %v636_v12, %v1675_v1  ;;  %v830_v15 = vadd.f32 %v829_v13, %v1677_v2  ;;  %v638_v16 = vpop.f32.mrb[63].mxu0  ;;  %v831_v17 = vpop.f32.mrb[63].mxu1 }
 0x213   : > { %955 = vst [vmem:[%s1687_s10 + $0x3c8] sm:$0xff] %v635_v10  ;;  %957 = vst [vmem:[%s1687_s10 + $0x3d8] sm:$0xff] %v828_v11  ;;  %v639_v18 = vadd.f32 %v638_v16, %v1679_v0  ;;  %v832_v1 = vadd.f32 %v831_v17, %v1681_v3 }
 0x214   : > { %958 = vst [vmem:[%s1687_s10 + $0x3e0] sm:$0xff] %v637_v14  ;;  %960 = vst [vmem:[%s1687_s10 + $0x3f0] sm:$0xff] %v830_v15 }
 0x215   : > { %959 = vst [vmem:[%s1687_s10 + $0x3e8] sm:$0xff] %v639_v18  ;;  %961 = vst [vmem:[%s1687_s10 + $0x3f8] sm:$0xff] %v832_v1 }
 0x216   : > { %1316 = shalt.err (!%p1313_p5)
}
 0x217   : > { %s1317_s29 = scalar_lea.hbm %s1938_s19, 16384  ;;  %s1321_s20 = scalar_lea.hbm %s2000_s3, 32768 }
 0x218   : > { %p1318_p9 = scmp.ne.s32.totalorder %s1938_s19, %s1317_s29  ;;  %p1322_p3 = scmp.lt.u32.totalorder %s1938_s19, %s2000_s3 }
 0x219   : > { %p1323_p7 = scmp.lt.u32.totalorder %s1321_s20, %s1317_s29  ;;  %p1325_p4 = scmp.lt.u32.totalorder %s1317_s29, %s1938_s19 }
 0x21a   : > { %p1319_p1 = pnand %p1318_p9, %p1518_p10 }
 0x21b   : > { %p1324_p13 = por %p1323_p7, %p1322_p3 }
 0x21c   : > { %p1320_p2 = pneg %p1319_p1 }
 0x21d   : > { %p1326_p6 = por %p1325_p4, %p1324_p13 }
 0x21f   : > { %p1327_p8 = pnand %p1326_p6, %p1320_p2 }
 0x221   : > { %1330 = shalt.err (!%p1327_p8)
}
 0x222   : > { %s1397_s10 = smov 512   ;;  %s1398_s11 = smov 32  }
 0x223   : > { %1149 = dma.vmem_to_hbm [thread:$0]  (%p1518_p10), %s1940_s9, 16384, %s1938_s19, %s963_s25, %s1397_s10, %s1397_s10, %s1398_s11  }
 0x224 PF: > { %s994_s15 = sand.u32 1, %s1369_s12   ;;  %p2018_p12 = scmp.ne.s32.totalorder %s2008_s23, 0 }
 0x225   : > { %p2019_p11 = scmp.ge.s32.totalorder %s1389_s17, 2  ;;  %s995_s18 = scalar_lea.sflag [#allocation4], %s994_s15 }
 0x227   : > { %p1160_p0 = pnand %p2019_p11, %p2018_p12 }
 0x229   : > { %1364 = dma.done.wait (!%p1160_p0), %s995_s18, 16384  }
 0x22a   : > { %1366 = vsyncadd (!%p1160_p0), %s995_s18, 4294950912  ;;  %s20_s17 = sadd.s32 1, %s1389_s17   ;;  %s2020_s12 = smov %s1373_s13 }
 0x22b   : > { %p17_p5 = scmp.ge.s32.totalorder %s20_s17, 4   ;;  %s2021_s13 = smov %s1377_s14 }
 0x22c   : > { %s2022_s14 = smov %s1527_s5  ;;  %s2023_s15 = smov %s1385_s16 }
 0x22d   : > { %s2024_s16 = smov %s2026_s28  ;;  %19 = sbr.rel (!%p17_p5) target bundleno = 7 (0x7), region = 81 }
 0x234   :  { %1000 = vsyncpa [#allocation3], 1 }
 0x235   :  { %1002 = vsyncpa [#allocation3 + $0x1], 1 }
 0x236   :  { %1003 = vsyncpa [#allocation6], 1 }
 0x237   :  { %1004 = vsyncpa [#allocation4], 1 }
 0x238   :  { %1006 = vsyncpa [#allocation4 + $0x1], 1 }

</bundles_post_ra>
